<compile_context>
chip_gen: v5e
topology: v5e:2x2
jax: 0.10.0
libtpu: 0.0.40
codegen_flags: <defaults>
</compile_context>

<pallas_src>
import math
from functools import partial

import jax
import jax.numpy as jnp
from jax import lax
from jax.experimental import pallas as pl
from jax.experimental.pallas import tpu as pltpu


def _round_up(x, m):
    return ((x + m - 1) // m) * m


def _token_embedding_kernel(tok_ref, table_ref, out_ref, *, tile, emb_size):
    """One grid step processes `tile` tokens.

    tok_ref   : SMEM (n_pad,) int32  -- scalar-prefetched token ids
    table_ref : VMEM (V, E)          -- full embedding table, resident (constant block index)
    out_ref   : VMEM (tile, E)       -- dense lane-aligned output tile
    """
    base = pl.program_id(0) * tile

    # Gather `tile` rows from the VMEM-resident table straight into the output tile.
    def gather_row(t, carry):
        tok = tok_ref[base + t]
        out_ref[pl.ds(t, 1), :] = table_ref[pl.ds(tok, 1), :]
        return carry

    lax.fori_loop(0, tile, gather_row, 0)

    # emb * sqrt(E), then F.normalize(p=2, dim=-1, eps=1e-12), vectorized over the whole tile.
    x = out_ref[...].astype(jnp.float32) * jnp.float32(math.sqrt(emb_size))
    sumsq = jnp.sum(x * x, axis=-1, keepdims=True)
    # 1 / max(sqrt(sumsq), eps)  ==  rsqrt(max(sumsq, eps**2))   (EUP rsqrt, no VALU divide)
    inv = lax.rsqrt(jnp.maximum(sumsq, jnp.float32(1e-24)))
    out_ref[...] = (x * inv).astype(out_ref.dtype)


def token_embedding_forward(tokens, emb_table, *, max_tile=128):
    """Pallas equivalent of TokenEmbedding.forward."""
    vocab_size, emb_size = emb_table.shape

    if tokens.shape[0] == 0:
        # Empty-token path: normalize(ones((1, E))) -- pure glue, done in plain JAX.
        ones = jnp.ones((1, emb_size), dtype=emb_table.dtype)
        norm = jnp.sqrt(jnp.sum(ones * ones, axis=-1, keepdims=True))
        return ones / jnp.maximum(norm, 1e-12)

    n = tokens.shape[0]
    tokens = tokens.astype(jnp.int32)

    # Tokens-per-grid-step tile: multiple of 8 (f32 sublanes), capped at max_tile.
    tile = min(max_tile, _round_up(n, 8))
    n_pad = _round_up(n, tile)
    if n_pad != n:
        tokens = jnp.concatenate(
            [tokens, jnp.zeros((n_pad - n,), jnp.int32)])  # pad with a valid token id

    # VMEM budget: resident table + double-buffered output tile + slack.
    itemsize = jnp.dtype(emb_table.dtype).itemsize
    table_bytes = vocab_size * emb_size * itemsize
    out_tile_bytes = tile * emb_size * itemsize
    vmem_limit = int(min(max(table_bytes + 4 * out_tile_bytes + (2 << 20), 32 << 20), 96 << 20))
    # TODO(synk): for vocabs too large to keep resident in VMEM (v7x has only 64 MiB),
    # switch to a manual per-row DMA gather (memory_space=pl.ANY + make_async_copy pipeline).

    grid_spec = pltpu.PrefetchScalarGridSpec(
        num_scalar_prefetch=1,
        grid=(n_pad // tile,),
        in_specs=[
            # Full table, constant block index -> DMA'd into VMEM once, stays resident.
            pl.BlockSpec((vocab_size, emb_size), lambda i, tok: (0, 0)),
        ],
        out_specs=pl.BlockSpec((tile, emb_size), lambda i, tok: (i, 0)),
    )

    kernel = partial(_token_embedding_kernel, tile=tile, emb_size=emb_size)

    out = pl.pallas_call(
        kernel,
        out_shape=jax.ShapeDtypeStruct((n_pad, emb_size), emb_table.dtype),
        grid_spec=grid_spec,
        compiler_params=pltpu.CompilerParams(
            dimension_semantics=("parallel",),   # independent token tiles (2 TCs on v7x)
            vmem_limit_bytes=vmem_limit,
        ),
    )(tokens, emb_table)

    return out[:n]


def _reference(tokens, emb_table):
    emb_size = emb_table.shape[1]
    emb = emb_table[tokens] * math.sqrt(emb_size)
    norm = jnp.sqrt(jnp.sum(emb * emb, axis=-1, keepdims=True))
    return emb / jnp.maximum(norm, 1e-12)


if __name__ == "__main__":
    # Small, deterministic setup consistent with the module's __init__.
    vocab_size = 32
    emb_size = 128  # lane-aligned embedding dim
    seq_len = 8

    key = jax.random.PRNGKey(0)
    k_w, k_tok, k_tok2 = jax.random.split(key, 3)

    # Deterministic "nn.Embedding" weight init (N(0,1), like PyTorch's default).
    emb_table = jax.random.normal(k_w, (vocab_size, emb_size), dtype=jnp.float32)
    tokens = jax.random.randint(k_tok, (seq_len,), 0, vocab_size, dtype=jnp.int32)

    out = jax.block_until_ready(token_embedding_forward(tokens, emb_table))
    ref = _reference(tokens, emb_table)
    assert out.shape == (seq_len, emb_size)
    assert jnp.allclose(out, ref, atol=1e-5, rtol=1e-5)

    # Also exercise a multi-tile + padded sequence length.
    tokens2 = jax.random.randint(k_tok2, (200,), 0, vocab_size, dtype=jnp.int32)
    out2 = jax.block_until_ready(token_embedding_forward(tokens2, emb_table))
    ref2 = _reference(tokens2, emb_table)
    assert out2.shape == (200, emb_size)
    assert jnp.allclose(out2, ref2, atol=1e-5, rtol=1e-5)

    # Empty-token branch (plain-JAX glue path).
    empty_out = jax.block_until_ready(
        token_embedding_forward(jnp.zeros((0,), jnp.int32), emb_table)
    )
    assert empty_out.shape == (1, emb_size)

    print("KERNEL_OK")
</pallas_src>

<mosaic_0001>
module attributes {stable_mosaic.version = 11 : i64} {
  func.func @_token_embedding_kernel(%arg0: i32, %arg1: memref<8xi32, #tpu.memory_space<smem>>, %arg2: memref<32x128xf32, #tpu.memory_space<vmem>>, %arg3: memref<8x128xf32, #tpu.memory_space<vmem>>) attributes {dimension_semantics = [#tpu.dimension_semantics<parallel>], iteration_bounds = array<i64: 1>, scalar_prefetch = 1 : i64, scratch_operands = 0 : i64, tpu.core_type = #tpu.core_type<tc>, window_params = [{pipeline_mode = #tpu.pipeline_mode<synchronous>, transform_indices = @transform_0, window_bounds = array<i64: 32, 128>}, {transform_indices = @transform_1, window_bounds = array<i64: 8, 128>}]} {
    %c8_i32 = arith.constant 8 : i32
    %0 = arith.muli %arg0, %c8_i32 : i32
    %c0_i32 = arith.constant 0 : i32
    %c8_i32_0 = arith.constant 8 : i32
    %1 = arith.addi %c0_i32, %c8_i32_0 : i32
    %c1_i32 = arith.constant 1 : i32
    scf.for %arg4 = %c0_i32 to %1 step %c1_i32  : i32 {
      %14 = arith.addi %0, %arg4 : i32
      %15 = arith.index_cast %14 : i32 to index
      %16 = memref.load %arg1[%15] : memref<8xi32, #tpu.memory_space<smem>>
      %17 = arith.index_cast %16 : i32 to index
      %c0_7 = arith.constant 0 : index
      %18 = vector.load %arg2[%17, %c0_7] : memref<32x128xf32, #tpu.memory_space<vmem>>, vector<1x128xf32>
      %19 = arith.index_cast %arg4 : i32 to index
      %c0_8 = arith.constant 0 : index
      %20 = vector.load %arg3[%19, %c0_8] : memref<8x128xf32, #tpu.memory_space<vmem>>, vector<1x128xf32>
      tpu.vector_store %arg3[%19, %c0_8], %18 {strides = array<i32>} : memref<8x128xf32, #tpu.memory_space<vmem>>, vector<1x128xf32>,
    }
    %c8_i32_1 = arith.constant 8 : i32
    %c0 = arith.constant 0 : index
    %c0_2 = arith.constant 0 : index
    %2 = vector.load %arg3[%c0, %c0_2] : memref<8x128xf32, #tpu.memory_space<vmem>>, vector<8x128xf32>
    %cst = arith.constant 11.3137083 : f32
    %3 = vector.broadcast %cst : f32 to vector<8x128xf32>
    %4 = arith.mulf %2, %3 : vector<8x128xf32>
    %5 = arith.mulf %4, %4 : vector<8x128xf32>
    %cst_3 = arith.constant dense<0.000000e+00> : vector<8xf32>
    %6 = vector.multi_reduction <add>, %5, %cst_3 [1] : vector<8x128xf32> to vector<8xf32>
    %7 = vector.shape_cast %6 : vector<8xf32> to vector<8x1xf32>
    %cst_4 = arith.constant 1.000000e-24 : f32
    %8 = vector.broadcast %cst_4 : f32 to vector<8x1xf32>
    %9 = arith.maximumf %7, %8 : vector<8x1xf32>
    %10 = math.rsqrt %9 : vector<8x1xf32>
    %11 = vector.broadcast %10 : vector<8x1xf32> to vector<8x128xf32>
    %12 = arith.mulf %4, %11 : vector<8x128xf32>
    %c0_5 = arith.constant 0 : index
    %c0_6 = arith.constant 0 : index
    %13 = vector.load %arg3[%c0_5, %c0_6] : memref<8x128xf32, #tpu.memory_space<vmem>>, vector<8x128xf32>
    tpu.vector_store %arg3[%c0_5, %c0_6], %12 {strides = array<i32>} : memref<8x128xf32, #tpu.memory_space<vmem>>, vector<8x128xf32>,
    return
  }
  func.func @transform_0(%arg0: i32, %arg1: memref<8xi32, #tpu.memory_space<smem>>) -> (i32, i32) {
    %c0_i32 = arith.constant 0 : i32
    %c0_i32_0 = arith.constant 0 : i32
    %c0_i32_1 = arith.constant 0 : i32
    return %c0_i32, %c0_i32_0 : i32, i32
  }
  func.func @transform_1(%arg0: i32, %arg1: memref<8xi32, #tpu.memory_space<smem>>) -> (i32, i32) {
    %c0_i32 = arith.constant 0 : i32
    %c0_i32_0 = arith.constant 0 : i32
    return %arg0, %c0_i32 : i32, i32
  }
}

</mosaic_0001>

<bundles_post_ra>
// kernel: tpu_custom_call.1
= control target key start
LH: loop header
LB: loop body
LE: loop exit
PB: predicated region body
PF: predicated region fallthrough
CT: control target
= control target key end

     0   :  { %s178_s12 = smov [#allocation3]   ;;  %s207_s0 = inlined_call_operand.hbm [shape: s32[8], index: 0, kind: input, shape index: {}]   ;;  %s208_s1 = inlined_call_operand.hbm [shape: f32[32,128], index: 1, kind: input, shape index: {}]   ;;  %s209_s2 = inlined_call_operand.hbm [shape: f32[8,128], index: 2, kind: output, shape index: {}]  }
   0x1   :  { %s8_s11 = sshll.u32 %s207_s0, 4  ;;  %s9_s11 = int_to_ptr.hbm [resolvable:$true] %s8_s11 }
   0x2   :  { %11 = dma.hbm_to_smem %s9_s11, 16, %s178_s12, [#allocation2] }
   0x3   :  { %168 = dma.done.wait [#allocation2], 16 }
   0x4   :  { %169 = vsyncadd [#allocation2], 4294967280 }
   0x5   :  { %14 = sfence }
   0x6   :  { %15 = vsyncpa [#allocation5], 0 }
   0x7   :  { %16 = vsyncpa [#allocation6], 0  ;;  %s21_s15 = sshll.u32 %s208_s1, 4  ;;  %s179_s16 = smov [#allocation4]   ;;  %s22_s15 = int_to_ptr.hbm [resolvable:$true] %s21_s15 }
   0x8   :  { %s23_s17 = sshll.u32 %s179_s16, 4  ;;  %s180_s18 = smov 128   ;;  %s24_s17 = int_to_ptr.vmem [resolvable:$true] %s23_s17 }
   0x9   :  { %s181_s19 = smov 8  }
   0xa   :  { %29 = dma.hbm_to_vmem [thread:$0]  %s22_s15, 512, %s24_s17, [#allocation5], %s180_s18, %s180_s18, %s181_s19  }
   0xb   :  { %170 = dma.done.wait [#allocation5], 512  }
   0xc   :  { %171 = vsyncadd [#allocation5], 4294966784  ;;  %s174_s0 = smov 0  }
   0xd LB: > { %s42_s20 = sld [smem:[#allocation3 + %s176_s0]]  ;;  %s45_s22 = scalar_lea.vmem [#allocation7], %s176_s0  ;;  %s176_s0 = sphi %s174_s0, %s40_s0  }
   0xe   : > { %s40_s0 = sadd.s32 1, %s176_s0  }
   0xf   : > { %p37_p0 = scmp.ge.s32.totalorder %s40_s0, 8  }
  0x10   :  { %s182_s1 = smov (%p37_p0), [#allocation7]   ;;  %s72_s26 = sshll.u32 (%p37_p0), %s209_s2, 4  ;;  %s73_s26 = int_to_ptr.hbm [resolvable:$true] %s72_s26 }
  0x11   :  { %39 = sbr.rel (!%p37_p0) target bundleno = 13 (0xd), region = 37  ;;  %s70_s23 = sshll.u32 (%p37_p0), %s182_s1, 4  ;;  %s71_s23 = int_to_ptr.vmem [resolvable:$true] %s70_s23 }
  0x13   : > { %s43_s21 = scalar_lea.vmem [#allocation4], %s42_s20 }
  0x14   : > { %v44_v0 = vld [vmem:[%s43_s21] sm:$0x1] }
  0x15   : > { %46 = vst [vmem:[%s45_s22] sm:$0x1] %v44_v0 }
  0x1c   :  { %v47_v1 = vld [vmem:[#allocation7] sm:$0xff] }
  0x1d   :  { %v48_v2 = vmul.f32 11.313708, %v47_v1 }
  0x1f   :  { %v49_v3 = vmul.f32 %v48_v2, %v48_v2 }
  0x21   :  { %50 = vadd.xlane.f32.xlu0 %v49_v3 }
  0x94   :  { %v51_v4 = vpop.xlane.xlu0 %50 }
  0x95   :  { %v52_v5 = vmax.f32 %v51_v4, 1e-24 }
  0x97   :  { %102 = vrsqrt.f32 %v52_v5  ;;  %vm59_vm1 = vweird.f32 %v52_v5 }
  0x9d   :  { %v103_v6 = vpop.eup %102 }
  0x9e   :  { %v54_v7 = vmul.f32 %v103_v6, %v52_v5  ;;  %vm60_vm0 = vweird.f32 %v103_v6 }
  0x9f   :  { %vm61_vm2 = vmor %vm59_vm1, %vm60_vm0 }
  0xa0   :  { %v55_v8 = vmul.f32 %v103_v6, %v54_v7 }
  0xa2   :  { %v56_v9 = vmul.f32 0.5, %v55_v8 }
  0xa4   :  { %v57_v10 = vsub.f32 1.5, %v56_v9 }
  0xa6   :  { %v58_v11 = vmul.f32 %v103_v6, %v57_v10 }
  0xa8   :  { %v62_v12 = vsel %vm61_vm2, %v103_v6, %v58_v11 }
  0xa9   :  { %v63_v13 = vmul.f32 %v62_v12, %v48_v2 }
  0xab   :  { %64 = vst [vmem:[#allocation7] sm:$0xff] %v63_v13 }
  0xac   :  { %75 = dma.vmem_to_hbm [thread:$0]  %s71_s23, 128, %s73_s26, [#allocation6]  }
  0xad   :  { %172 = dma.done.wait [#allocation6], 128  }
  0xae   :  { %173 = vsyncadd [#allocation6], 4294967168 }
  0xaf   :  { %80 = vsyncpa [#allocation5], 1 }
  0xb0   :  { %81 = vsyncpa [#allocation6], 1 }

</bundles_post_ra>
